<compile_context>
chip_gen: v7x
topology: tpu7x:2x2x1
jax: 0.10.0
libtpu: 0.0.40
codegen_flags: <defaults>
</compile_context>

<pallas_src>
import jax
import jax.numpy as jnp
from jax.experimental import pallas as pl
from jax.experimental.pallas import tpu as pltpu


def _linear_kernel(x_ref, wb_ref, o_ref):
    """out = x @ W^T + b, K=2 contraction unrolled onto the VPU.

    x_ref:  (B, 2)      f32
    wb_ref: (3, OUT)    f32  -- rows [w_col0, w_col1, bias]
    o_ref:  (B, OUT)    f32
    """
    x = x_ref[...]                                    # (B, 2)
    # Two vmul + two vadd on the VPU, no MXU involvement.
    acc = x[:, 0:1] * wb_ref[0:1, :]                  # (B,1)*(1,OUT) -> (B,OUT)
    acc = acc + x[:, 1:2] * wb_ref[1:2, :]
    o_ref[...] = acc + wb_ref[2:3, :]                 # + bias row


def prepare_params(weight, bias):
    """One-time parameter packing (keeps the per-call path at 2 operands).

    weight: (OUT, IN) PyTorch layout; bias: (OUT,)
    returns wb: (IN+1, OUT) = [W^T ; bias]
    """
    return jnp.concatenate([weight.T, bias.reshape(1, -1)], axis=0)


def rms_nnet_forward(x, wb):
    """x: (B, 2) f32; wb: (3, OUT) f32 packed [W^T ; bias]."""
    B, _ = x.shape
    out_f = wb.shape[1]
    return pl.pallas_call(
        _linear_kernel,
        out_shape=jax.ShapeDtypeStruct((B, out_f), x.dtype),
        # Whole-array VMEM residency: one DMA per operand, no grid bookkeeping.
        in_specs=[
            pl.BlockSpec(memory_space=pltpu.MemorySpace.VMEM),
            pl.BlockSpec(memory_space=pltpu.MemorySpace.VMEM),
        ],
        out_specs=pl.BlockSpec(memory_space=pltpu.MemorySpace.VMEM),
    )(x, wb)


if __name__ == "__main__":
    key = jax.random.PRNGKey(0)
    k_x, k_w, k_b = jax.random.split(key, 3)

    B, IN, OUT = 8, 2, 4
    # Deterministic param init mimicking nn.Linear's uniform(-1/sqrt(in), 1/sqrt(in)).
    bound = 1.0 / (IN ** 0.5)
    weight = jax.random.uniform(k_w, (OUT, IN), jnp.float32, -bound, bound)
    bias = jax.random.uniform(k_b, (OUT,), jnp.float32, -bound, bound)
    x = jax.random.normal(k_x, (B, IN), jnp.float32)

    # Layout fix / packing done once, outside the hot path.
    wb = prepare_params(weight, bias)

    out = rms_nnet_forward(x, wb)
    jax.block_until_ready(out)

    # Reference check against plain JAX (same semantics as PyTorch Linear).
    ref = x @ weight.T + bias
    assert out.shape == (B, OUT)
    assert jnp.allclose(out, ref, atol=1e-5, rtol=1e-5)

    print("KERNEL_OK")
</pallas_src>

<mosaic_0001>
module attributes {stable_mosaic.version = 11 : i64} {
  func.func @_linear_kernel(%arg0: memref<8x2xf32, #tpu.memory_space<vmem>>, %arg1: memref<3x4xf32, #tpu.memory_space<vmem>>, %arg2: memref<8x4xf32, #tpu.memory_space<vmem>>) attributes {dimension_semantics = [], scalar_prefetch = 0 : i64, scratch_operands = 0 : i64, tpu.core_type = #tpu.core_type<tc>} {
    %c0 = arith.constant 0 : index
    %c0_0 = arith.constant 0 : index
    %0 = vector.load %arg0[%c0, %c0_0] : memref<8x2xf32, #tpu.memory_space<vmem>>, vector<8x2xf32>
    %1 = vector.extract_strided_slice %0 {offsets = [0, 0], sizes = [8, 1], strides = [1, 1]} : vector<8x2xf32> to vector<8x1xf32>
    %c0_1 = arith.constant 0 : index
    %c0_2 = arith.constant 0 : index
    %2 = vector.load %arg1[%c0_1, %c0_2] : memref<3x4xf32, #tpu.memory_space<vmem>>, vector<1x4xf32>
    %3 = vector.broadcast %1 : vector<8x1xf32> to vector<8x4xf32>
    %4 = vector.broadcast %2 : vector<1x4xf32> to vector<8x4xf32>
    %5 = arith.mulf %3, %4 : vector<8x4xf32>
    %6 = vector.extract_strided_slice %0 {offsets = [0, 1], sizes = [8, 1], strides = [1, 1]} : vector<8x2xf32> to vector<8x1xf32>
    %c1 = arith.constant 1 : index
    %c0_3 = arith.constant 0 : index
    %7 = vector.load %arg1[%c1, %c0_3] : memref<3x4xf32, #tpu.memory_space<vmem>>, vector<1x4xf32>
    %8 = vector.broadcast %6 : vector<8x1xf32> to vector<8x4xf32>
    %9 = vector.broadcast %7 : vector<1x4xf32> to vector<8x4xf32>
    %10 = arith.mulf %8, %9 : vector<8x4xf32>
    %11 = arith.addf %5, %10 : vector<8x4xf32>
    %c2 = arith.constant 2 : index
    %c0_4 = arith.constant 0 : index
    %12 = vector.load %arg1[%c2, %c0_4] : memref<3x4xf32, #tpu.memory_space<vmem>>, vector<1x4xf32>
    %13 = vector.broadcast %12 : vector<1x4xf32> to vector<8x4xf32>
    %14 = arith.addf %11, %13 : vector<8x4xf32>
    %c0_5 = arith.constant 0 : index
    %c0_6 = arith.constant 0 : index
    %15 = vector.load %arg2[%c0_5, %c0_6] : memref<8x4xf32, #tpu.memory_space<vmem>>, vector<8x4xf32>
    tpu.vector_store %arg2[%c0_5, %c0_6], %14 {strides = array<i32>} : memref<8x4xf32, #tpu.memory_space<vmem>>, vector<8x4xf32>,
    return
  }
}

</mosaic_0001>

<bundles_post_ra>
// kernel: tpu_custom_call.1
= control target key start
LH: loop header
LB: loop body
LE: loop exit
PB: predicated region body
PF: predicated region fallthrough
CT: control target
= control target key end

     0   :  { %v53_v0 = vmov 0   ;;  %v54_v2 = vmov 1   ;;  %vm40_vm0 = vcmask 31744   ;;  %s85_s0 = inlined_call_operand.vmem [shape: f32[8,2], index: 0, kind: input, shape index: {}]   ;;  %s86_s1 = inlined_call_operand.vmem [shape: f32[3,4], index: 1, kind: input, shape index: {}]   ;;  %s87_s2 = inlined_call_operand.vmem [shape: f32[8,4], index: 2, kind: output, shape index: {}]  }
   0x1   :  { %51 = vset.pattern.permute.xlu0 %v53_v0  ;;  %v11_v1 = vld [vmem:[%s85_s0] sm:$0xff] }
   0x2   :  { %15 = vperm.xlu0 %51, %v11_v1   ;;  %v46_v4 = vld [vmem:[%s86_s1] ss:$0 sm:$0xff]  ;;  %v47_v5 = vld [vmem:[%s86_s1 + $0x1] ss:$0 sm:$0xff]  ;;  %v48_v9 = vld [vmem:[%s86_s1 + $0x2] ss:$0 sm:$0xff] }
   0x6   :  { %52 = vset.pattern.permute.xlu0 %v54_v2 }
   0x7   :  { %25 = vperm.xlu0 %52, %v11_v1  }
  0x81   :  { %v16_v3 = vpop.permute.xlu0 %15 }
  0x82   :  { %v22_v7 = vmul.f32 %v46_v4, %v16_v3 }
  0x86   :  { %v26_v6 = vpop.permute.xlu0 %25 }
  0x87   :  { %v32_v8 = vmul.f32 %v47_v5, %v26_v6 }
  0x89   :  { %v33_v10 = vadd.f32 %v32_v8, %v22_v7 }
  0x8b   :  { %v39_v11 = vadd.f32 %v48_v9, %v33_v10 }
  0x8d   :  { %41 = vst.msk [vmem:[%s87_s2] sm:$0xff] %vm40_vm0, %v39_v11 }

</bundles_post_ra>
